<compile_context>
chip_gen: v7x
topology: tpu7x:2x2x1
jax: 0.10.0
libtpu: 0.0.40
codegen_flags: <defaults>
</compile_context>

<pallas_src>
import functools

import jax
import jax.numpy as jnp
from jax.experimental import pallas as pl
from jax.experimental.pallas import tpu as pltpu

_LANE = 128
_LANE_CANDIDATES = (4096, 2048, 1024, 512, 256, 128)


def _vmem_capacity_bytes():
    try:
        return int(pltpu.get_tpu_info().vmem_capacity_bytes)
    except Exception:
        return 64 * 1024 * 1024  # conservative default: v7x per-TensorCore VMEM


if _vmem_capacity_bytes() >= 128 * 1024 * 1024:   # v5e / v6e (128 MiB physical)
    _TARGET_TILE_BYTES = 4 * 1024 * 1024
    _VMEM_LIMIT_BYTES = 48 * 1024 * 1024
else:                                             # v7x (64 MiB per TC) / unknown
    _TARGET_TILE_BYTES = 2 * 1024 * 1024
    _VMEM_LIMIT_BYTES = 32 * 1024 * 1024


def _min_sublane(itemsize):
    # dtype packing: f32 -> 8 rows, bf16 -> 16, int8/fp8 -> 32.
    return {4: 8, 2: 16, 1: 32}.get(itemsize, 8)


def _general_relu_kernel(params_ref, x_ref, o_ref, *, has_leak, has_sub, has_maxv):
    """Elementwise GeneralReLU on one VMEM tile. params_ref: SMEM f32[3]."""
    x = x_ref[...]
    if has_leak:
        leak = params_ref[0].astype(x.dtype)
        y = jnp.where(x > 0, x, x * leak)
    else:
        y = jnp.maximum(x, jnp.zeros((), x.dtype))
    if has_sub:
        y = y - params_ref[1].astype(x.dtype)
    if has_maxv:
        y = jnp.minimum(y, params_ref[2].astype(x.dtype))
    o_ref[...] = y.astype(o_ref.dtype)


def _choose_layout_2d(n, itemsize, target_bytes):
    """n % 128 == 0. Pick a lane-dense slab (rows, lane_w) and a row tile."""
    lane_w = _LANE
    for w in _LANE_CANDIDATES:
        if n % w == 0:
            lane_w = w
            break
    rows = n // lane_w
    sub = _min_sublane(itemsize)
    desired_rows = max(1, target_bytes // (lane_w * itemsize))
    if rows <= desired_rows:
        tile_rows = rows  # block covers the full first dim (any size is legal)
    else:
        tile_rows = max(sub, (desired_rows // sub) * sub)
    return lane_w, rows, tile_rows


def _choose_tile_1d(n, itemsize, target_bytes):
    """Ragged n. 1-D block: either the full extent or a multiple of sublane*128."""
    chunk = _min_sublane(itemsize) * _LANE
    max_elems = max(chunk, ((target_bytes // itemsize) // chunk) * chunk)
    if n <= max_elems:
        return n          # single block equal to the full array dim (always legal)
    return max_elems      # multiple of 128; Pallas masks the partial final block


def general_relu(x, leak=None, sub=None, maxv=None, *, donate=False):
    """Elementwise GeneralReLU on an array of any shape via Pallas."""
    orig_shape = x.shape
    dtype = x.dtype
    n = x.size
    if n == 0:
        return x
    itemsize = jnp.dtype(dtype).itemsize

    # Values live in SMEM so distinct (leak, sub, maxv) values reuse one compile.
    params = jnp.array(
        [leak if leak is not None else 0.0,
         sub if sub is not None else 0.0,
         maxv if maxv is not None else 0.0],
        dtype=jnp.float32)

    kernel = functools.partial(
        _general_relu_kernel,
        has_leak=leak is not None,
        has_sub=sub is not None,
        has_maxv=maxv is not None)

    flat = x.reshape(-1)

    if n % _LANE == 0:
        # Lane-dense 2-D slab, large blocks.
        lane_w, rows, tile_rows = _choose_layout_2d(n, itemsize, _TARGET_TILE_BYTES)
        x_op = flat.reshape(rows, lane_w)
        grid = (pl.cdiv(rows, tile_rows),)
        block = (tile_rows, lane_w)
        index_map = lambda i: (i, 0)
    else:
        # Ragged size: flat 1-D layout, no pad / no tail slice (no extra HBM passes).
        tile = _choose_tile_1d(n, itemsize, _TARGET_TILE_BYTES)
        x_op = flat
        grid = (pl.cdiv(n, tile),)
        block = (tile,)
        index_map = lambda i: (i,)

    out = pl.pallas_call(
        kernel,
        out_shape=jax.ShapeDtypeStruct(x_op.shape, dtype),
        grid_spec=pltpu.PrefetchScalarGridSpec(
            num_scalar_prefetch=0,
            grid=grid,
            in_specs=[pl.BlockSpec(memory_space=pltpu.MemorySpace.SMEM),
                      pl.BlockSpec(block, index_map)],
            out_specs=pl.BlockSpec(block, index_map),
        ),
        compiler_params=pltpu.CompilerParams(
            dimension_semantics=("parallel",),
            vmem_limit_bytes=_VMEM_LIMIT_BYTES,
        ),
        # Optional in-place semantics: reuse x's HBM buffer when caller donates it.
        input_output_aliases=({1: 0} if donate else {}),
    )(params, x_op)

    return out.reshape(orig_shape)


if __name__ == "__main__":
    key = jax.random.PRNGKey(0)
    k0, k1, k2, k3 = jax.random.split(key, 4)

    # Typical fastai config: GeneralReLU(leak=0.1, sub=0.4, maxv=6.0); NCHW input.
    x = jax.random.normal(k0, (2, 4, 16, 16), dtype=jnp.float32)
    leak, sub, maxv = 0.1, 0.4, 6.0
    out = jax.block_until_ready(general_relu(x, leak=leak, sub=sub, maxv=maxv))
    ref = jnp.minimum(jnp.where(x > 0, x, leak * x) - sub, maxv)
    assert out.shape == x.shape and out.dtype == x.dtype
    assert jnp.allclose(out, ref, atol=1e-6, rtol=1e-6)

    # Multi-tile lane-dense path, default relu config (several large blocks).
    x2 = jax.random.normal(k1, (8, 64, 64, 64), dtype=jnp.float32)
    out2 = jax.block_until_ready(general_relu(x2))
    assert jnp.allclose(out2, jnp.maximum(x2, 0.0), atol=1e-6, rtol=1e-6)

    # Small ragged size: 1-D path, single full-extent block (no pad, no slice).
    x3 = jax.random.normal(k2, (3, 5, 7), dtype=jnp.float32)
    out3 = jax.block_until_ready(general_relu(x3, leak=0.2))
    assert jnp.allclose(out3, jnp.where(x3 > 0, x3, 0.2 * x3), atol=1e-6, rtol=1e-6)

    # Large ragged size: 1-D path with a masked partial final block.
    x4 = jax.random.normal(k3, (2_100_003,), dtype=jnp.float32)
    out4 = jax.block_until_ready(general_relu(x4, leak=0.05, sub=0.25, maxv=3.0))
    ref4 = jnp.minimum(jnp.where(x4 > 0, x4, 0.05 * x4) - 0.25, 3.0)
    assert jnp.allclose(out4, ref4, atol=1e-6, rtol=1e-6)

    print("KERNEL_OK")
</pallas_src>

<mosaic_0001>
module attributes {stable_mosaic.version = 11 : i64} {
  func.func @_general_relu_kernel(%arg0: i32, %arg1: memref<3xf32, #tpu.memory_space<smem>>, %arg2: memref<1x2048xf32, #tpu.memory_space<vmem>>, %arg3: memref<1x2048xf32, #tpu.memory_space<vmem>>) attributes {dimension_semantics = [#tpu.dimension_semantics<parallel>], iteration_bounds = array<i64: 1>, scalar_prefetch = 0 : i64, scratch_operands = 0 : i64, tpu.core_type = #tpu.core_type<tc>, window_params = [{transform_indices = @transform_0, window_bounds = array<i64: 3>}, {transform_indices = @transform_1, window_bounds = array<i64: 1, 2048>}, {transform_indices = @transform_2, window_bounds = array<i64: 1, 2048>}]} {
    %c0 = arith.constant 0 : index
    %c0_0 = arith.constant 0 : index
    %0 = vector.load %arg2[%c0, %c0_0] : memref<1x2048xf32, #tpu.memory_space<vmem>>, vector<1x2048xf32>
    %c0_1 = arith.constant 0 : index
    %1 = memref.load %arg1[%c0_1] : memref<3xf32, #tpu.memory_space<smem>>
    %cst = arith.constant 0.000000e+00 : f32
    %2 = vector.broadcast %cst : f32 to vector<1x2048xf32>
    %3 = arith.cmpf ogt, %0, %2 : vector<1x2048xf32>
    %4 = vector.broadcast %1 : f32 to vector<1x2048xf32>
    %5 = arith.mulf %0, %4 : vector<1x2048xf32>
    %6 = arith.select %3, %0, %5 : vector<1x2048xi1>, vector<1x2048xf32>
    %c1 = arith.constant 1 : index
    %7 = memref.load %arg1[%c1] : memref<3xf32, #tpu.memory_space<smem>>
    %8 = vector.broadcast %7 : f32 to vector<1x2048xf32>
    %9 = arith.subf %6, %8 : vector<1x2048xf32>
    %c2 = arith.constant 2 : index
    %10 = memref.load %arg1[%c2] : memref<3xf32, #tpu.memory_space<smem>>
    %11 = vector.broadcast %10 : f32 to vector<1x2048xf32>
    %12 = arith.minimumf %9, %11 : vector<1x2048xf32>
    %c0_2 = arith.constant 0 : index
    %c0_3 = arith.constant 0 : index
    %13 = vector.load %arg3[%c0_2, %c0_3] : memref<1x2048xf32, #tpu.memory_space<vmem>>, vector<1x2048xf32>
    tpu.vector_store %arg3[%c0_2, %c0_3], %12 {strides = array<i32>} : memref<1x2048xf32, #tpu.memory_space<vmem>>, vector<1x2048xf32>,
    return
  }
  func.func @transform_0(%arg0: i32) -> i32 {
    %c0_i32 = arith.constant 0 : i32
    %c0_i32_0 = arith.constant 0 : i32
    return %c0_i32 : i32
  }
  func.func @transform_1(%arg0: i32) -> (i32, i32) {
    %c0_i32 = arith.constant 0 : i32
    %c0_i32_0 = arith.constant 0 : i32
    return %arg0, %c0_i32 : i32, i32
  }
  func.func @transform_2(%arg0: i32) -> (i32, i32) {
    %c0_i32 = arith.constant 0 : i32
    %c0_i32_0 = arith.constant 0 : i32
    return %arg0, %c0_i32 : i32, i32
  }
}

</mosaic_0001>

<bundles_post_ra>
// kernel: tpu_custom_call.1
= control target key start
LH: loop header
LB: loop body
LE: loop exit
PB: predicated region body
PF: predicated region fallthrough
CT: control target
= control target key end

     0   :  { %7 = vsyncpa [#allocation5], 0  ;;  %s190_s0 = inlined_call_operand.hbm [shape: f32[3], index: 0, kind: input, shape index: {}]   ;;  %s191_s1 = inlined_call_operand.hbm [shape: f32[1,2048], index: 1, kind: input, shape index: {}]   ;;  %s192_s2 = inlined_call_operand.hbm [shape: f32[1,2048], index: 2, kind: output, shape index: {}]  }
   0x1   :  { %8 = vsyncpa [#allocation3], 0 }
   0x2   :  { %9 = vsyncpa [#allocation4], 0  ;;  %s76_s11 = scalar_lea.hbm %s190_s0, 16 }
   0x3   :  { %p77_p0 = scmp.ne.s32.totalorder %s190_s0, %s76_s11  ;;  %p80_p1 = scmp.lt.u32.totalorder %s76_s11, %s190_s0 }
   0x5   :  { %p82_p2 = pnand %p80_p1, %p77_p0 }
   0x7   :  { %85 = shalt.err (!%p82_p2)
}
   0x8   :  { %s136_s16 = smov [#allocation2]   ;;  %s137_s19 = smov [#allocation6]  }
   0x9   :  { %17 = dma.hbm_to_smem %s190_s0, 16, %s136_s16, [#allocation5]  }
   0xa   :  { %s24_s20 = sshll.u32 %s137_s19, 4  ;;  %s86_s23 = scalar_lea.hbm %s191_s1, 256  ;;  %s25_s20 = int_to_ptr.vmem [resolvable:$true] %s24_s20 }
   0xb   :  { %p87_p3 = scmp.ne.s32.totalorder %s191_s1, %s86_s23  ;;  %p90_p4 = scmp.lt.u32.totalorder %s86_s23, %s191_s1 }
   0xd   :  { %p92_p5 = pnand %p90_p4, %p87_p3 }
   0xf   :  { %95 = shalt.err (!%p92_p5)
}
  0x10   :  { %s96_s28 = scalar_lea.vmem %s25_s20, 256  ;;  %p101_p7 = scmp.lt.s32.totalorder %s25_s20, %s25_s20 }
  0x11   :  { %p97_p6 = scmp.ne.s32.totalorder %s25_s20, %s96_s28  ;;  %p102_p8 = scmp.lt.s32.totalorder %s96_s28, %s96_s28 }
  0x13   :  { %p103_p9 = por %p102_p8, %p101_p7 }
  0x15   :  { %p104_p10 = pnand %p103_p9, %p97_p6 }
  0x17   :  { %107 = shalt.err (!%p104_p10)
}
  0x18   :  { %27 = dma.hbm_to_vmem [thread:$0]  %s191_s1, 256, %s25_s20, [#allocation3]  }
  0x19   :  { %130 = dma.done.wait [#allocation5], 16  }
  0x1a   :  { %131 = vsyncadd [#allocation5], 4294967280 }
  0x1b   :  { %132 = dma.done.wait [#allocation3], 256  }
  0x1c   :  { %133 = vsyncadd [#allocation3], 4294967040 }
  0x1d   :  { %34 = sfence }
  0x1e   :  { %s37_s30 = sld [smem:[#allocation2]]  ;;  %s71_s3 = sld [smem:[#allocation2 + $0x1]]  ;;  %v35_v0 = vld [vmem:[#allocation6] sm:$0xff]  ;;  %v36_v1 = vld [vmem:[#allocation6 + $0x8] sm:$0xff] }
  0x1f   :  { %s72_s4 = sld [smem:[#allocation2 + $0x2]]  ;;  %vm38_vm0 = vcmp.gt.f32.partialorder %v35_v0, 0.0  ;;  %vm39_vm1 = vcmp.gt.f32.partialorder %v36_v1, 0.0  ;;  %s138_s1 = smov [#allocation7]  }
  0x20   :  { %s61_s5 = sshll.u32 %s138_s1, 4  ;;  %s62_s5 = int_to_ptr.vmem [resolvable:$true] %s61_s5 }
  0x21   :  { %s108_s6 = scalar_lea.vmem %s62_s5, 256  ;;  %p113_p12 = scmp.lt.s32.totalorder %s62_s5, %s62_s5 }
  0x22   :  { %p109_p11 = scmp.ne.s32.totalorder %s62_s5, %s108_s6  ;;  %p114_p13 = scmp.lt.s32.totalorder %s108_s6, %s108_s6 }
  0x24   :  { %v40_v2 = vstv %s37_s30  ;;  %v46_v4 = vstv %s71_s3  ;;  %p115_p0 = por %p114_p13, %p113_p12 }
  0x25   :  { %v41_v3 = vmul.f32 %v40_v2, %v35_v0  ;;  %v42_v5 = vmul.f32 %v40_v2, %v36_v1  ;;  %v50_v7 = vstv %s72_s4 }
  0x26   :  { %p116_p1 = pnand %p115_p0, %p109_p11 }
  0x27   :  { %v43_v6 = vsel %vm38_vm0, %v35_v0, %v41_v3  ;;  %v44_v8 = vsel %vm39_vm1, %v36_v1, %v42_v5 }
  0x28   :  { %v47_v9 = vsub.f32 %v43_v6, %v46_v4  ;;  %v48_v10 = vsub.f32 %v44_v8, %v46_v4 }
  0x2a   :  { %v51_v11 = vmin.f32 %v47_v9, %v50_v7  ;;  %v52_v12 = vmin.f32 %v48_v10, %v50_v7 }
  0x2c   :  { %53 = vst [vmem:[#allocation7] sm:$0xff] %v51_v11  ;;  %54 = vst [vmem:[#allocation7 + $0x8] sm:$0xff] %v52_v12 }
  0x2d   :  { %119 = shalt.err (!%p116_p1)
}
  0x2e   :  { %s120_s9 = scalar_lea.hbm %s192_s2, 256 }
  0x2f   :  { %p121_p2 = scmp.ne.s32.totalorder %s192_s2, %s120_s9  ;;  %p124_p3 = scmp.lt.u32.totalorder %s120_s9, %s192_s2 }
  0x31   :  { %p126_p4 = pnand %p124_p3, %p121_p2 }
  0x33   :  { %129 = shalt.err (!%p126_p4)
}
  0x34   :  { %64 = dma.vmem_to_hbm [thread:$0]  %s62_s5, 256, %s192_s2, [#allocation4]  }
  0x35   :  { %134 = dma.done.wait [#allocation4], 256  }
  0x36   :  { %135 = vsyncadd [#allocation4], 4294967040 }
  0x37   :  { %68 = vsyncpa [#allocation3], 1 }
  0x38   :  { %69 = vsyncpa [#allocation4], 1 }
  0x39   :  { %70 = vsyncpa [#allocation5], 1 }

</bundles_post_ra>
